<compile_context>
chip_gen: v7x
topology: tpu7x:2x2x1
jax: 0.10.0
libtpu: 0.0.40
codegen_flags: <defaults>
</compile_context>

<pallas_src>
import jax
import jax.numpy as jnp
from jax.experimental import pallas as pl
from jax.experimental.pallas import tpu as pltpu


def _round_up(x, m):
    return (x + m - 1) // m * m


def _part_model_kernel(tok_ref, table_ref, w1_ref, b1_ref, w2_ref, b2_ref, o_ref):
    # tok_ref  : (S, B_pad, 1) int32    token ids, one leading slab per position
    # table_ref: (V_pad, E_pad) bf16    zero-padded embedding table
    # w1_ref   : (S, E_pad, H_pad) bf16 first linear, split per token position
    # b1_ref   : (B_pad, H_pad) f32     bias, pre-broadcast over rows
    # w2_ref   : (H_pad, H_pad) bf16    second linear
    # b2_ref   : (B_pad, H_pad) f32
    # o_ref    : (B_pad, H_pad) f32
    S = tok_ref.shape[0]
    B_pad = tok_ref.shape[1]
    V_pad = table_ref.shape[0]

    table = table_ref[...]
    lane_ids = jax.lax.broadcasted_iota(jnp.int32, (B_pad, V_pad), 1)

    # h_pre = b1 + sum_s  onehot(tok_s) @ table @ W1[s]
    acc = b1_ref[...]
    for s in range(S):                                        # static unroll, S == 6
        onehot = (lane_ids == tok_ref[s]).astype(table.dtype)  # (B_pad, V_pad) bf16
        emb = jnp.dot(onehot, table, preferred_element_type=jnp.float32)
        acc = acc + jnp.dot(emb.astype(w1_ref.dtype), w1_ref[s],
                            preferred_element_type=jnp.float32)

    h = jnp.tanh(acc).astype(w2_ref.dtype)
    y = jnp.dot(h, w2_ref[...], preferred_element_type=jnp.float32) + b2_ref[...]
    o_ref[...] = y


def part_model_forward(token_ids, embed_table, w1, b1, w2, b2):
    """token_ids: (B, S) int; returns (B, w2.shape[1]) float32."""
    B, S = token_ids.shape
    V, E = embed_table.shape
    H = w1.shape[1]
    H_out = w2.shape[1]
    assert w1.shape[0] == S * E

    # Lane/sublane aligned, zero-padded shapes.
    B_pad = _round_up(max(B, 8), 8)
    V_pad = _round_up(V, 128)
    E_pad = _round_up(E, 128)
    H_pad = _round_up(max(H, H_out), 128)

    bf16 = jnp.bfloat16
    f32 = jnp.float32

    tok_p = jnp.pad(token_ids.astype(jnp.int32), ((0, B_pad - B), (0, 0)))
    tok_p = jnp.transpose(tok_p)[:, :, None]                      # (S, B_pad, 1)

    table_p = jnp.pad(embed_table, ((0, V_pad - V), (0, E_pad - E))).astype(bf16)
    w1_p = jnp.pad(w1.reshape(S, E, H),
                   ((0, 0), (0, E_pad - E), (0, H_pad - H))).astype(bf16)
    w2_p = jnp.pad(w2, ((0, H_pad - H), (0, H_pad - H_out))).astype(bf16)
    b1_p = jnp.broadcast_to(
        jnp.pad(b1.reshape(1, H).astype(f32), ((0, 0), (0, H_pad - H))),
        (B_pad, H_pad))
    b2_p = jnp.broadcast_to(
        jnp.pad(b2.reshape(1, H_out).astype(f32), ((0, 0), (0, H_pad - H_out))),
        (B_pad, H_pad))

    vmem = pl.BlockSpec(memory_space=pltpu.MemorySpace.VMEM)
    out_p = pl.pallas_call(
        _part_model_kernel,
        out_shape=jax.ShapeDtypeStruct((B_pad, H_pad), f32),
        in_specs=[vmem] * 6,
        out_specs=vmem,
    )(tok_p, table_p, w1_p, b1_p, w2_p, b2_p)

    return out_p[:B, :H_out]


if __name__ == "__main__":
    embed_dim = 50
    seq_len = 6
    vocab_size = 64
    batch = 2
    hidden = 2 * embed_dim          # 100

    key = jax.random.PRNGKey(0)
    k_emb, k_w1, k_b1, k_w2, k_b2, k_tok = jax.random.split(key, 6)

    embed_table = jax.random.normal(k_emb, (vocab_size, embed_dim), jnp.float32) * 0.1
    w1 = jax.random.normal(k_w1, (seq_len * embed_dim, hidden), jnp.float32) * 0.05
    b1 = jax.random.normal(k_b1, (1, hidden), jnp.float32) * 0.05
    w2 = jax.random.normal(k_w2, (hidden, hidden), jnp.float32) * 0.05
    b2 = jax.random.normal(k_b2, (1, hidden), jnp.float32) * 0.05

    token_ids = jax.random.randint(k_tok, (batch, seq_len), 0, vocab_size, jnp.int32)

    fwd = jax.jit(part_model_forward)
    out = jax.block_until_ready(fwd(token_ids, embed_table, w1, b1, w2, b2))

    # Pure-JAX f32 reference (kernel uses bf16 operands, f32 accumulation).
    x_ref = jnp.take(embed_table, token_ids, axis=0).reshape(batch, -1)
    ref = jnp.tanh(x_ref @ w1 + b1) @ w2 + b2

    assert out.shape == (batch, hidden)
    err = float(jnp.max(jnp.abs(out - ref)))
    assert jnp.allclose(out, ref, atol=1e-2, rtol=1e-2), err

    print("KERNEL_OK")
</pallas_src>

<mosaic_0001>
module attributes {stable_mosaic.version = 11 : i64} {
  func.func @_part_model_kernel(%arg0: memref<6x8x1xi32, #tpu.memory_space<vmem>>, %arg1: memref<128x128xbf16, #tpu.memory_space<vmem>>, %arg2: memref<6x128x128xbf16, #tpu.memory_space<vmem>>, %arg3: memref<8x128xf32, #tpu.memory_space<vmem>>, %arg4: memref<128x128xbf16, #tpu.memory_space<vmem>>, %arg5: memref<8x128xf32, #tpu.memory_space<vmem>>, %arg6: memref<8x128xf32, #tpu.memory_space<vmem>>) attributes {dimension_semantics = [], scalar_prefetch = 0 : i64, scratch_operands = 0 : i64, tpu.core_type = #tpu.core_type<tc>} {
    %c0 = arith.constant 0 : index
    %c0_0 = arith.constant 0 : index
    %0 = vector.load %arg1[%c0, %c0_0] : memref<128x128xbf16, #tpu.memory_space<vmem>>, vector<128x128xbf16>
    %1 = tpu.iota {dimensions = array<i32: 1>} : vector<8x128xi32>
    %c0_1 = arith.constant 0 : index
    %c0_2 = arith.constant 0 : index
    %2 = vector.load %arg3[%c0_1, %c0_2] : memref<8x128xf32, #tpu.memory_space<vmem>>, vector<8x128xf32>
    %c0_3 = arith.constant 0 : index
    %c0_4 = arith.constant 0 : index
    %c0_5 = arith.constant 0 : index
    %3 = vector.load %arg0[%c0_3, %c0_4, %c0_5] : memref<6x8x1xi32, #tpu.memory_space<vmem>>, vector<1x8x1xi32>
    %4 = vector.shape_cast %3 : vector<1x8x1xi32> to vector<8x1xi32>
    %5 = vector.broadcast %4 : vector<8x1xi32> to vector<8x128xi32>
    %6 = arith.cmpi eq, %1, %5 : vector<8x128xi32>
    %7 = arith.extui %6 : vector<8x128xi1> to vector<8x128xi32>
    %8 = arith.sitofp %7 : vector<8x128xi32> to vector<8x128xf32>
    %9 = arith.truncf %8 : vector<8x128xf32> to vector<8x128xbf16>
    %cst = arith.constant dense<0.000000e+00> : vector<8x128xf32>
    %10 = tpu.matmul %9, %0, %cst {dimension_numbers = #tpu.dot_dimension_numbers<[1], [0], [0], [1], [0, 0, 1, 1], [], []>} : vector<8x128xbf16>, vector<128x128xbf16>, vector<8x128xf32> -> vector<8x128xf32>
    %11 = arith.truncf %10 : vector<8x128xf32> to vector<8x128xbf16>
    %c0_6 = arith.constant 0 : index
    %c0_7 = arith.constant 0 : index
    %c0_8 = arith.constant 0 : index
    %12 = vector.load %arg2[%c0_6, %c0_7, %c0_8] : memref<6x128x128xbf16, #tpu.memory_space<vmem>>, vector<1x128x128xbf16>
    %13 = vector.shape_cast %12 : vector<1x128x128xbf16> to vector<128x128xbf16>
    %cst_9 = arith.constant dense<0.000000e+00> : vector<8x128xf32>
    %14 = tpu.matmul %11, %13, %cst_9 {dimension_numbers = #tpu.dot_dimension_numbers<[1], [0], [0], [1], [0, 0, 1, 1], [], []>} : vector<8x128xbf16>, vector<128x128xbf16>, vector<8x128xf32> -> vector<8x128xf32>
    %15 = arith.addf %2, %14 : vector<8x128xf32>
    %c1 = arith.constant 1 : index
    %c0_10 = arith.constant 0 : index
    %c0_11 = arith.constant 0 : index
    %16 = vector.load %arg0[%c1, %c0_10, %c0_11] : memref<6x8x1xi32, #tpu.memory_space<vmem>>, vector<1x8x1xi32>
    %17 = vector.shape_cast %16 : vector<1x8x1xi32> to vector<8x1xi32>
    %18 = vector.broadcast %17 : vector<8x1xi32> to vector<8x128xi32>
    %19 = arith.cmpi eq, %1, %18 : vector<8x128xi32>
    %20 = arith.extui %19 : vector<8x128xi1> to vector<8x128xi32>
    %21 = arith.sitofp %20 : vector<8x128xi32> to vector<8x128xf32>
    %22 = arith.truncf %21 : vector<8x128xf32> to vector<8x128xbf16>
    %cst_12 = arith.constant dense<0.000000e+00> : vector<8x128xf32>
    %23 = tpu.matmul %22, %0, %cst_12 {dimension_numbers = #tpu.dot_dimension_numbers<[1], [0], [0], [1], [0, 0, 1, 1], [], []>} : vector<8x128xbf16>, vector<128x128xbf16>, vector<8x128xf32> -> vector<8x128xf32>
    %24 = arith.truncf %23 : vector<8x128xf32> to vector<8x128xbf16>
    %c1_13 = arith.constant 1 : index
    %c0_14 = arith.constant 0 : index
    %c0_15 = arith.constant 0 : index
    %25 = vector.load %arg2[%c1_13, %c0_14, %c0_15] : memref<6x128x128xbf16, #tpu.memory_space<vmem>>, vector<1x128x128xbf16>
    %26 = vector.shape_cast %25 : vector<1x128x128xbf16> to vector<128x128xbf16>
    %cst_16 = arith.constant dense<0.000000e+00> : vector<8x128xf32>
    %27 = tpu.matmul %24, %26, %cst_16 {dimension_numbers = #tpu.dot_dimension_numbers<[1], [0], [0], [1], [0, 0, 1, 1], [], []>} : vector<8x128xbf16>, vector<128x128xbf16>, vector<8x128xf32> -> vector<8x128xf32>
    %28 = arith.addf %15, %27 : vector<8x128xf32>
    %c2 = arith.constant 2 : index
    %c0_17 = arith.constant 0 : index
    %c0_18 = arith.constant 0 : index
    %29 = vector.load %arg0[%c2, %c0_17, %c0_18] : memref<6x8x1xi32, #tpu.memory_space<vmem>>, vector<1x8x1xi32>
    %30 = vector.shape_cast %29 : vector<1x8x1xi32> to vector<8x1xi32>
    %31 = vector.broadcast %30 : vector<8x1xi32> to vector<8x128xi32>
    %32 = arith.cmpi eq, %1, %31 : vector<8x128xi32>
    %33 = arith.extui %32 : vector<8x128xi1> to vector<8x128xi32>
    %34 = arith.sitofp %33 : vector<8x128xi32> to vector<8x128xf32>
    %35 = arith.truncf %34 : vector<8x128xf32> to vector<8x128xbf16>
    %cst_19 = arith.constant dense<0.000000e+00> : vector<8x128xf32>
    %36 = tpu.matmul %35, %0, %cst_19 {dimension_numbers = #tpu.dot_dimension_numbers<[1], [0], [0], [1], [0, 0, 1, 1], [], []>} : vector<8x128xbf16>, vector<128x128xbf16>, vector<8x128xf32> -> vector<8x128xf32>
    %37 = arith.truncf %36 : vector<8x128xf32> to vector<8x128xbf16>
    %c2_20 = arith.constant 2 : index
    %c0_21 = arith.constant 0 : index
    %c0_22 = arith.constant 0 : index
    %38 = vector.load %arg2[%c2_20, %c0_21, %c0_22] : memref<6x128x128xbf16, #tpu.memory_space<vmem>>, vector<1x128x128xbf16>
    %39 = vector.shape_cast %38 : vector<1x128x128xbf16> to vector<128x128xbf16>
    %cst_23 = arith.constant dense<0.000000e+00> : vector<8x128xf32>
    %40 = tpu.matmul %37, %39, %cst_23 {dimension_numbers = #tpu.dot_dimension_numbers<[1], [0], [0], [1], [0, 0, 1, 1], [], []>} : vector<8x128xbf16>, vector<128x128xbf16>, vector<8x128xf32> -> vector<8x128xf32>
    %41 = arith.addf %28, %40 : vector<8x128xf32>
    %c3 = arith.constant 3 : index
    %c0_24 = arith.constant 0 : index
    %c0_25 = arith.constant 0 : index
    %42 = vector.load %arg0[%c3, %c0_24, %c0_25] : memref<6x8x1xi32, #tpu.memory_space<vmem>>, vector<1x8x1xi32>
    %43 = vector.shape_cast %42 : vector<1x8x1xi32> to vector<8x1xi32>
    %44 = vector.broadcast %43 : vector<8x1xi32> to vector<8x128xi32>
    %45 = arith.cmpi eq, %1, %44 : vector<8x128xi32>
    %46 = arith.extui %45 : vector<8x128xi1> to vector<8x128xi32>
    %47 = arith.sitofp %46 : vector<8x128xi32> to vector<8x128xf32>
    %48 = arith.truncf %47 : vector<8x128xf32> to vector<8x128xbf16>
    %cst_26 = arith.constant dense<0.000000e+00> : vector<8x128xf32>
    %49 = tpu.matmul %48, %0, %cst_26 {dimension_numbers = #tpu.dot_dimension_numbers<[1], [0], [0], [1], [0, 0, 1, 1], [], []>} : vector<8x128xbf16>, vector<128x128xbf16>, vector<8x128xf32> -> vector<8x128xf32>
    %50 = arith.truncf %49 : vector<8x128xf32> to vector<8x128xbf16>
    %c3_27 = arith.constant 3 : index
    %c0_28 = arith.constant 0 : index
    %c0_29 = arith.constant 0 : index
    %51 = vector.load %arg2[%c3_27, %c0_28, %c0_29] : memref<6x128x128xbf16, #tpu.memory_space<vmem>>, vector<1x128x128xbf16>
    %52 = vector.shape_cast %51 : vector<1x128x128xbf16> to vector<128x128xbf16>
    %cst_30 = arith.constant dense<0.000000e+00> : vector<8x128xf32>
    %53 = tpu.matmul %50, %52, %cst_30 {dimension_numbers = #tpu.dot_dimension_numbers<[1], [0], [0], [1], [0, 0, 1, 1], [], []>} : vector<8x128xbf16>, vector<128x128xbf16>, vector<8x128xf32> -> vector<8x128xf32>
    %54 = arith.addf %41, %53 : vector<8x128xf32>
    %c4 = arith.constant 4 : index
    %c0_31 = arith.constant 0 : index
    %c0_32 = arith.constant 0 : index
    %55 = vector.load %arg0[%c4, %c0_31, %c0_32] : memref<6x8x1xi32, #tpu.memory_space<vmem>>, vector<1x8x1xi32>
    %56 = vector.shape_cast %55 : vector<1x8x1xi32> to vector<8x1xi32>
    %57 = vector.broadcast %56 : vector<8x1xi32> to vector<8x128xi32>
    %58 = arith.cmpi eq, %1, %57 : vector<8x128xi32>
    %59 = arith.extui %58 : vector<8x128xi1> to vector<8x128xi32>
    %60 = arith.sitofp %59 : vector<8x128xi32> to vector<8x128xf32>
    %61 = arith.truncf %60 : vector<8x128xf32> to vector<8x128xbf16>
    %cst_33 = arith.constant dense<0.000000e+00> : vector<8x128xf32>
    %62 = tpu.matmul %61, %0, %cst_33 {dimension_numbers = #tpu.dot_dimension_numbers<[1], [0], [0], [1], [0, 0, 1, 1], [], []>} : vector<8x128xbf16>, vector<128x128xbf16>, vector<8x128xf32> -> vector<8x128xf32>
    %63 = arith.truncf %62 : vector<8x128xf32> to vector<8x128xbf16>
    %c4_34 = arith.constant 4 : index
    %c0_35 = arith.constant 0 : index
    %c0_36 = arith.constant 0 : index
    %64 = vector.load %arg2[%c4_34, %c0_35, %c0_36] : memref<6x128x128xbf16, #tpu.memory_space<vmem>>, vector<1x128x128xbf16>
    %65 = vector.shape_cast %64 : vector<1x128x128xbf16> to vector<128x128xbf16>
    %cst_37 = arith.constant dense<0.000000e+00> : vector<8x128xf32>
    %66 = tpu.matmul %63, %65, %cst_37 {dimension_numbers = #tpu.dot_dimension_numbers<[1], [0], [0], [1], [0, 0, 1, 1], [], []>} : vector<8x128xbf16>, vector<128x128xbf16>, vector<8x128xf32> -> vector<8x128xf32>
    %67 = arith.addf %54, %66 : vector<8x128xf32>
    %c5 = arith.constant 5 : index
    %c0_38 = arith.constant 0 : index
    %c0_39 = arith.constant 0 : index
    %68 = vector.load %arg0[%c5, %c0_38, %c0_39] : memref<6x8x1xi32, #tpu.memory_space<vmem>>, vector<1x8x1xi32>
    %69 = vector.shape_cast %68 : vector<1x8x1xi32> to vector<8x1xi32>
    %70 = vector.broadcast %69 : vector<8x1xi32> to vector<8x128xi32>
    %71 = arith.cmpi eq, %1, %70 : vector<8x128xi32>
    %72 = arith.extui %71 : vector<8x128xi1> to vector<8x128xi32>
    %73 = arith.sitofp %72 : vector<8x128xi32> to vector<8x128xf32>
    %74 = arith.truncf %73 : vector<8x128xf32> to vector<8x128xbf16>
    %cst_40 = arith.constant dense<0.000000e+00> : vector<8x128xf32>
    %75 = tpu.matmul %74, %0, %cst_40 {dimension_numbers = #tpu.dot_dimension_numbers<[1], [0], [0], [1], [0, 0, 1, 1], [], []>} : vector<8x128xbf16>, vector<128x128xbf16>, vector<8x128xf32> -> vector<8x128xf32>
    %76 = arith.truncf %75 : vector<8x128xf32> to vector<8x128xbf16>
    %c5_41 = arith.constant 5 : index
    %c0_42 = arith.constant 0 : index
    %c0_43 = arith.constant 0 : index
    %77 = vector.load %arg2[%c5_41, %c0_42, %c0_43] : memref<6x128x128xbf16, #tpu.memory_space<vmem>>, vector<1x128x128xbf16>
    %78 = vector.shape_cast %77 : vector<1x128x128xbf16> to vector<128x128xbf16>
    %cst_44 = arith.constant dense<0.000000e+00> : vector<8x128xf32>
    %79 = tpu.matmul %76, %78, %cst_44 {dimension_numbers = #tpu.dot_dimension_numbers<[1], [0], [0], [1], [0, 0, 1, 1], [], []>} : vector<8x128xbf16>, vector<128x128xbf16>, vector<8x128xf32> -> vector<8x128xf32>
    %80 = arith.addf %67, %79 : vector<8x128xf32>
    %81 = math.tanh %80 : vector<8x128xf32>
    %82 = arith.truncf %81 : vector<8x128xf32> to vector<8x128xbf16>
    %c0_45 = arith.constant 0 : index
    %c0_46 = arith.constant 0 : index
    %83 = vector.load %arg4[%c0_45, %c0_46] : memref<128x128xbf16, #tpu.memory_space<vmem>>, vector<128x128xbf16>
    %cst_47 = arith.constant dense<0.000000e+00> : vector<8x128xf32>
    %84 = tpu.matmul %82, %83, %cst_47 {dimension_numbers = #tpu.dot_dimension_numbers<[1], [0], [0], [1], [0, 0, 1, 1], [], []>} : vector<8x128xbf16>, vector<128x128xbf16>, vector<8x128xf32> -> vector<8x128xf32>
    %c0_48 = arith.constant 0 : index
    %c0_49 = arith.constant 0 : index
    %85 = vector.load %arg5[%c0_48, %c0_49] : memref<8x128xf32, #tpu.memory_space<vmem>>, vector<8x128xf32>
    %86 = arith.addf %84, %85 : vector<8x128xf32>
    %c0_50 = arith.constant 0 : index
    %c0_51 = arith.constant 0 : index
    %87 = vector.load %arg6[%c0_50, %c0_51] : memref<8x128xf32, #tpu.memory_space<vmem>>, vector<8x128xf32>
    tpu.vector_store %arg6[%c0_50, %c0_51], %86 {strides = array<i32>} : memref<8x128xf32, #tpu.memory_space<vmem>>, vector<8x128xf32>,
    return
  }
}

</mosaic_0001>

<bundles_post_ra>
// kernel: part_model_forward.1
= control target key start
LH: loop header
LB: loop body
LE: loop exit
PB: predicated region body
PF: predicated region fallthrough
CT: control target
= control target key end

     0   :  { %v1774_v0 = vmov 0   ;;  %v1775_v4 = vmov 0.0   ;;  %vm1776_vm0 = vmmov 0   ;;  %v40_v16 = vlaneseq  ;;  %s2240_s0 = inlined_call_operand.vmem [shape: s32[6,8,1], index: 0, kind: input, shape index: {}]   ;;  %s2241_s1 = inlined_call_operand.vmem [shape: bf16[128,128], index: 1, kind: input, shape index: {}]   ;;  %s2242_s2 = inlined_call_operand.vmem [shape: bf16[6,128,128], index: 2, kind: input, shape index: {}]   ;;  %s2243_s4 = inlined_call_operand.vmem [shape: bf16[128,128], index: 4, kind: input, shape index: {}]   ;;  %s2244_s3 = inlined_call_operand.vmem [shape: f32[8,128], index: 3, kind: input, shape index: {}]   ;;  %s2245_s5 = inlined_call_operand.vmem [shape: f32[8,128], index: 5, kind: input, shape index: {}]   ;;  %s2246_s6 = inlined_call_operand.vmem [shape: f32[8,128], index: 6, kind: output, shape index: {}]  }
   0x1   :  { %1706 = vset.pattern.permute.xlu0 %v1774_v0  ;;  %v43_v1 = vld [vmem:[%s2240_s0] sm:$0xff]  ;;  %1707 = vset.pattern.permute.xlu1 %v1774_v0  ;;  %v1156_v2 = vld [vmem:[%s2240_s0 + $0x8] sm:$0xff]  ;;  %v1184_v3 = vld [vmem:[%s2240_s0 + $0x10] sm:$0xff]  ;;  %v1777_v19 = vmov 1.0|1.0  }
   0x2   :  { %45 = vperm.xlu0 %1706, %v43_v1   ;;  %1421 = vmatprep.subr.bf16.mxu0 %v1775_v4  ;;  %v1826_v5 = vld [vmem:[%s2241_s1] sm:$0xff]   ;;  %v1212_v6 = vld [vmem:[%s2240_s0 + $0x18] sm:$0xff]  ;;  %v1840_v7 = vld [vmem:[%s2241_s1 + $0x8] sm:$0xff]   ;;  %v1893_v17 = vand.u32 127, %v40_v16 }
   0x3   :  { %404 = vperm.xlu1 %1707, %v1184_v3   ;;  %1437 = vmatprep.mubr.msk.bf16.mxu0 %vm1776_vm0, %v1775_v4  ;;  %v1240_v8 = vld [vmem:[%s2240_s0 + $0x20] sm:$0xff]  ;;  %v1268_v9 = vld [vmem:[%s2240_s0 + $0x28] sm:$0xff]  ;;  %v1853_v10 = vld [vmem:[%s2241_s1 + $0x10] sm:$0xff]  }
   0x4   :  { %1441 = vmatprep.subr.bf16.mxu1 %v1775_v4  ;;  %1457 = vmatprep.mubr.msk.bf16.mxu1 %vm1776_vm0, %v1775_v4  ;;  %v1860_v11 = vld [vmem:[%s2241_s1 + $0x18] sm:$0xff]   ;;  %v1867_v12 = vld [vmem:[%s2241_s1 + $0x20] sm:$0xff]   ;;  %v1874_v13 = vld [vmem:[%s2241_s1 + $0x28] sm:$0xff]  }
   0x5   :  { %1422 = vmatpush3.bf16.msra.mxu0 %v1826_v5  ;;  %v1881_v14 = vld [vmem:[%s2241_s1 + $0x30] sm:$0xff]   ;;  %v1888_v15 = vld [vmem:[%s2241_s1 + $0x38] sm:$0xff]   ;;  %v1716_v21 = vld [vmem:[%s2242_s2] sm:$0xff]  }
   0x6   :  { %248 = vperm.xlu0 %1706, %v1156_v2   ;;  %1423 = vmatprep.subr.bf16.mxu0 %v1775_v4  ;;  %v1717_v22 = vld [vmem:[%s2242_s2 + $0x8] sm:$0xff]   ;;  %v1718_v23 = vld [vmem:[%s2242_s2 + $0x10] sm:$0xff]   ;;  %v1719_v24 = vld [vmem:[%s2242_s2 + $0x18] sm:$0xff]  }
   0x7   :  { %560 = vperm.xlu1 %1707, %v1212_v6   ;;  %1442 = vmatpush3.bf16.msra.mxu1 %v1716_v21  ;;  %v1720_v25 = vld [vmem:[%s2242_s2 + $0x20] sm:$0xff]   ;;  %v1721_v27 = vld [vmem:[%s2242_s2 + $0x28] sm:$0xff]   ;;  %v1722_v28 = vld [vmem:[%s2242_s2 + $0x30] sm:$0xff]  }
   0x8   :  { %1443 = vmatprep.subr.bf16.mxu1 %v1775_v4  ;;  %v1723_v29 = vld [vmem:[%s2242_s2 + $0x38] sm:$0xff]   ;;  %v1724_v34 = vld [vmem:[%s2242_s2 + $0x40] sm:$0xff]   ;;  %v1725_v39 = vld [vmem:[%s2242_s2 + $0x48] sm:$0xff]  }
   0x9   :  { %1424 = vmatpush3.bf16.msra.mxu0 %v1840_v7  ;;  %v1726_v40 = vld [vmem:[%s2242_s2 + $0x50] sm:$0xff]   ;;  %v1727_v41 = vld [vmem:[%s2242_s2 + $0x58] sm:$0xff]   ;;  %v1728_v42 = vld [vmem:[%s2242_s2 + $0x60] sm:$0xff]  }
   0xa   :  { %716 = vperm.xlu0 %1706, %v1240_v8   ;;  %1425 = vmatprep.subr.bf16.mxu0 %v1775_v4  ;;  %v1729_v43 = vld [vmem:[%s2242_s2 + $0x68] sm:$0xff]   ;;  %v1730_v44 = vld [vmem:[%s2242_s2 + $0x70] sm:$0xff]   ;;  %v1731_v45 = vld [vmem:[%s2242_s2 + $0x78] sm:$0xff]  }
   0xb   :  { %872 = vperm.xlu1 %1707, %v1268_v9   ;;  %1444 = vmatpush3.bf16.msra.mxu1 %v1717_v22  ;;  %v1732_v47 = vld [vmem:[%s2242_s2 + $0x80] sm:$0xff]   ;;  %v1733_v52 = vld [vmem:[%s2242_s2 + $0x88] sm:$0xff]   ;;  %v1734_v55 = vld [vmem:[%s2242_s2 + $0x90] sm:$0xff]  }
   0xc   :  { %1445 = vmatprep.subr.bf16.mxu1 %v1775_v4  ;;  %v1764_v53 = vld [vmem:[%s2243_s4] sm:$0xff]   ;;  %v1765_v54 = vld [vmem:[%s2243_s4 + $0x8] sm:$0xff]   ;;  %v1766_v56 = vld [vmem:[%s2243_s4 + $0x10] sm:$0xff]  }
   0xd   :  { %1426 = vmatpush3.bf16.msra.mxu0 %v1853_v10  ;;  %v1735_v57 = vld [vmem:[%s2242_s2 + $0x98] sm:$0xff]   ;;  %v1736_v59 = vld [vmem:[%s2242_s2 + $0xa0] sm:$0xff]   ;;  %v1737_v60 = vld [vmem:[%s2242_s2 + $0xa8] sm:$0xff]  }
   0xe   :  { %1427 = vmatprep.subr.bf16.mxu0 %v1775_v4  ;;  %v1767_v58 = vld [vmem:[%s2243_s4 + $0x18] sm:$0xff]   ;;  %v1738_v61 = vld [vmem:[%s2242_s2 + $0xb0] sm:$0xff]   ;;  %v1740_v0 = vld [vmem:[%s2242_s2 + $0xc0] sm:$0xff]  }
   0xf   :  { %1446 = vmatpush3.bf16.msra.mxu1 %v1718_v23  ;;  %v1739_v62 = vld [vmem:[%s2242_s2 + $0xb8] sm:$0xff]   ;;  %v1741_v6 = vld [vmem:[%s2242_s2 + $0xc8] sm:$0xff]   ;;  %v1744_v9 = vld [vmem:[%s2242_s2 + $0xe0] sm:$0xff]  }
  0x10   :  { %1447 = vmatprep.subr.bf16.mxu1 %v1775_v4  ;;  %v1743_v8 = vld [vmem:[%s2242_s2 + $0xd8] sm:$0xff]   ;;  %v1752_v22 = vld [vmem:[%s2242_s2 + $0x120] sm:$0xff]   ;;  %v1753_v23 = vld [vmem:[%s2242_s2 + $0x128] sm:$0xff]  }
  0x11   :  { %1428 = vmatpush3.bf16.msra.mxu0 %v1860_v11  ;;  %v1751_v21 = vld [vmem:[%s2242_s2 + $0x118] sm:$0xff]  }
  0x12   :  { %1429 = vmatprep.subr.bf16.mxu0 %v1775_v4 }
  0x13   :  { %1448 = vmatpush3.bf16.msra.mxu1 %v1719_v24  ;;  %v1754_v24 = vld [vmem:[%s2242_s2 + $0x130] sm:$0xff]  }
  0x14   :  { %1449 = vmatprep.subr.bf16.mxu1 %v1775_v4 }
  0x15   :  { %1430 = vmatpush3.bf16.msra.mxu0 %v1867_v12 }
  0x16   :  { %1431 = vmatprep.subr.bf16.mxu0 %v1775_v4 }
  0x17   :  { %1450 = vmatpush3.bf16.msra.mxu1 %v1720_v25  ;;  %v1755_v25 = vld [vmem:[%s2242_s2 + $0x138] sm:$0xff]  }
  0x18   :  { %1451 = vmatprep.subr.bf16.mxu1 %v1775_v4 }
  0x19   :  { %1432 = vmatpush3.bf16.msra.mxu0 %v1874_v13 }
  0x1a   :  { %1433 = vmatprep.subr.bf16.mxu0 %v1775_v4 }
  0x1b   :  { %1452 = vmatpush3.bf16.msra.mxu1 %v1721_v27  ;;  %v1756_v27 = vld [vmem:[%s2242_s2 + $0x140] sm:$0xff]  }
  0x1c   :  { %1453 = vmatprep.subr.bf16.mxu1 %v1775_v4 }
  0x1d   :  { %1434 = vmatpush3.bf16.msra.mxu0 %v1881_v14 }
  0x1e   :  { %1435 = vmatprep.subr.bf16.mxu0 %v1775_v4 }
  0x1f   :  { %1454 = vmatpush3.bf16.msra.mxu1 %v1722_v28 }
  0x20   :  { %1455 = vmatprep.subr.bf16.mxu1 %v1775_v4 }
  0x21   :  { %1436 = vmatpush3.bf16.msra.mxu0 %v1888_v15 }
  0x22   :  { %1461 = vmatprep.subr.bf16.mxu0 %v1775_v4 }
  0x23   :  { %1456 = vmatpush3.bf16.msra.mxu1 %v1723_v29 }
  0x24   :  { %1481 = vmatprep.subr.bf16.mxu1 %v1775_v4 }
  0x81   :  { %v46_v18 = vpop.permute.xlu0 %45 }
  0x82   :  { %vm47_vm1 = vcmp.eq.s32.totalorder %v1893_v17, %v46_v18  ;;  %v405_v26 = vpop.permute.xlu1 %404 }
  0x83   :  { %vm1146_vm2 = vmpackc.low %vm47_vm1, %vm47_vm1  ;;  %vm406_vm5 = vcmp.eq.s32.totalorder %v1893_v17, %v405_v26 }
  0x84   :  { %1438 = vmatmul.mubr.msk.bf16.vlgmr.msra.gmra.mrb[0].mxu0 %vm1146_vm2, %v1777_v19  ;;  %vm1186_vm6 = vmpackc.low %vm406_vm5, %vm406_vm5 }
  0x85   :  { %1462 = vmatpush3.bf16.msra.mxu0 %v1826_v5  ;;  %1477 = vmatprep.mubr.msk.bf16.mxu0 %vm1776_vm0, %v1775_v4  ;;  %v249_v20 = vpop.permute.xlu0 %248 }
  0x86   :  { %1463 = vmatprep.subr.bf16.mxu0 %v1775_v4  ;;  %vm250_vm3 = vcmp.eq.s32.totalorder %v1893_v17, %v249_v20  ;;  %v561_v30 = vpop.permute.xlu1 %560  ;;  %v1750_v20 = vld [vmem:[%s2242_s2 + $0x110] sm:$0xff]  }
  0x87   :  { %vm1158_vm4 = vmpackc.low %vm250_vm3, %vm250_vm3  ;;  %vm562_vm7 = vcmp.eq.s32.totalorder %v1893_v17, %v561_v30 }
  0x88   :  { %vm1214_vm8 = vmpackc.low %vm562_vm7, %vm562_vm7 }
  0x89   :  { %1464 = vmatpush3.bf16.msra.mxu0 %v1840_v7  ;;  %v717_v31 = vpop.permute.xlu0 %716 }
  0x8a   :  { %1465 = vmatprep.subr.bf16.mxu0 %v1775_v4  ;;  %vm718_vm9 = vcmp.eq.s32.totalorder %v1893_v17, %v717_v31  ;;  %v873_v32 = vpop.permute.xlu1 %872 }
  0x8b   :  { %vm1242_vm10 = vmpackc.low %vm718_vm9, %vm718_vm9  ;;  %vm874_vm11 = vcmp.eq.s32.totalorder %v1893_v17, %v873_v32  ;;  %v1757_v32 = vld [vmem:[%s2242_s2 + $0x148] sm:$0xff]  }
  0x8c   :  { %vm1270_vm12 = vmpackc.low %vm874_vm11, %vm874_vm11 }
  0x8d   :  { %1466 = vmatpush3.bf16.msra.mxu0 %v1853_v10 }
  0x8e   :  { %1467 = vmatprep.subr.bf16.mxu0 %v1775_v4 }
  0x91   :  { %1468 = vmatpush3.bf16.msra.mxu0 %v1860_v11 }
  0x92   :  { %1469 = vmatprep.subr.bf16.mxu0 %v1775_v4 }
  0x95   :  { %1470 = vmatpush3.bf16.msra.mxu0 %v1867_v12 }
  0x96   :  { %1471 = vmatprep.subr.bf16.mxu0 %v1775_v4 }
  0x99   :  { %1472 = vmatpush3.bf16.msra.mxu0 %v1874_v13 }
  0x9a   :  { %1473 = vmatprep.subr.bf16.mxu0 %v1775_v4 }
  0x9d   :  { %1474 = vmatpush3.bf16.msra.mxu0 %v1881_v14 }
  0x9e   :  { %1475 = vmatprep.subr.bf16.mxu0 %v1775_v4 }
  0xa1   :  { %1476 = vmatpush3.bf16.msra.mxu0 %v1888_v15 }
  0xa2   :  { %1501 = vmatprep.subr.bf16.mxu0 %v1775_v4 }
  0xa4   :  { %1478 = vmatmul.mubr.msk.bf16.vlgmr.msra.gmra.mrb[4].mxu0 %vm1158_vm4, %v1777_v19 }
  0xa5   :  { %1502 = vmatpush3.bf16.msra.mxu0 %v1826_v5  ;;  %1517 = vmatprep.mubr.msk.bf16.mxu0 %vm1776_vm0, %v1775_v4 }
  0xa6   :  { %1503 = vmatprep.subr.bf16.mxu0 %v1775_v4 }
  0xa9   :  { %1504 = vmatpush3.bf16.msra.mxu0 %v1840_v7 }
  0xaa   :  { %1505 = vmatprep.subr.bf16.mxu0 %v1775_v4 }
  0xad   :  { %1506 = vmatpush3.bf16.msra.mxu0 %v1853_v10 }
  0xae   :  { %1507 = vmatprep.subr.bf16.mxu0 %v1775_v4 }
  0xb1   :  { %1508 = vmatpush3.bf16.msra.mxu0 %v1860_v11 }
  0xb2   :  { %1509 = vmatprep.subr.bf16.mxu0 %v1775_v4 }
  0xb5   :  { %1510 = vmatpush3.bf16.msra.mxu0 %v1867_v12 }
  0xb6   :  { %1511 = vmatprep.subr.bf16.mxu0 %v1775_v4 }
  0xb9   :  { %1512 = vmatpush3.bf16.msra.mxu0 %v1874_v13 }
  0xba   :  { %1513 = vmatprep.subr.bf16.mxu0 %v1775_v4 }
  0xbd   :  { %1514 = vmatpush3.bf16.msra.mxu0 %v1881_v14 }
  0xbe   :  { %1515 = vmatprep.subr.bf16.mxu0 %v1775_v4 }
  0xc1   :  { %1516 = vmatpush3.bf16.msra.mxu0 %v1888_v15 }
  0xc2   :  { %1541 = vmatprep.subr.bf16.mxu0 %v1775_v4 }
  0xc4   :  { %1518 = vmatmul.mubr.msk.bf16.vlgmr.msra.gmra.mrb[8].mxu0 %vm1186_vm6, %v1777_v19 }
  0xc5   :  { %1542 = vmatpush3.bf16.msra.mxu0 %v1826_v5  ;;  %1557 = vmatprep.mubr.msk.bf16.mxu0 %vm1776_vm0, %v1775_v4 }
  0xc6   :  { %1543 = vmatprep.subr.bf16.mxu0 %v1775_v4 }
  0xc9   :  { %1544 = vmatpush3.bf16.msra.mxu0 %v1840_v7 }
  0xca   :  { %1545 = vmatprep.subr.bf16.mxu0 %v1775_v4 }
  0xcd   :  { %1546 = vmatpush3.bf16.msra.mxu0 %v1853_v10 }
  0xce   :  { %1547 = vmatprep.subr.bf16.mxu0 %v1775_v4 }
  0xd1   :  { %1548 = vmatpush3.bf16.msra.mxu0 %v1860_v11 }
  0xd2   :  { %1549 = vmatprep.subr.bf16.mxu0 %v1775_v4 }
  0xd5   :  { %1550 = vmatpush3.bf16.msra.mxu0 %v1867_v12 }
  0xd6   :  { %1551 = vmatprep.subr.bf16.mxu0 %v1775_v4 }
  0xd9   :  { %1552 = vmatpush3.bf16.msra.mxu0 %v1874_v13 }
  0xda   :  { %1553 = vmatprep.subr.bf16.mxu0 %v1775_v4 }
  0xdd   :  { %1554 = vmatpush3.bf16.msra.mxu0 %v1881_v14 }
  0xde   :  { %1555 = vmatprep.subr.bf16.mxu0 %v1775_v4 }
  0xe1   :  { %1556 = vmatpush3.bf16.msra.mxu0 %v1888_v15 }
  0xe2   :  { %1581 = vmatprep.subr.bf16.mxu0 %v1775_v4 }
  0xe4   :  { %1558 = vmatmul.mubr.msk.bf16.vlgmr.msra.gmra.mrb[12].mxu0 %vm1214_vm8, %v1777_v19 }
  0xe5   :  { %1582 = vmatpush3.bf16.msra.mxu0 %v1826_v5  ;;  %1597 = vmatprep.mubr.msk.bf16.mxu0 %vm1776_vm0, %v1775_v4 }
  0xe6   :  { %1583 = vmatprep.subr.bf16.mxu0 %v1775_v4 }
  0xe9   :  { %1584 = vmatpush3.bf16.msra.mxu0 %v1840_v7 }
  0xea   :  { %1585 = vmatprep.subr.bf16.mxu0 %v1775_v4 }
  0xed   :  { %1586 = vmatpush3.bf16.msra.mxu0 %v1853_v10 }
  0xee   :  { %1587 = vmatprep.subr.bf16.mxu0 %v1775_v4 }
  0xf1   :  { %1588 = vmatpush3.bf16.msra.mxu0 %v1860_v11 }
  0xf2   :  { %1589 = vmatprep.subr.bf16.mxu0 %v1775_v4 }
  0xf5   :  { %1590 = vmatpush3.bf16.msra.mxu0 %v1867_v12 }
  0xf6   :  { %1591 = vmatprep.subr.bf16.mxu0 %v1775_v4 }
  0xf9   :  { %1592 = vmatpush3.bf16.msra.mxu0 %v1874_v13 }
  0xfa   :  { %1593 = vmatprep.subr.bf16.mxu0 %v1775_v4 }
  0xfd   :  { %1594 = vmatpush3.bf16.msra.mxu0 %v1881_v14 }
  0xfe   :  { %1595 = vmatprep.subr.bf16.mxu0 %v1775_v4 }
 0x101   :  { %1596 = vmatpush3.bf16.msra.mxu0 %v1888_v15 }
 0x102   :  { %1621 = vmatprep.subr.bf16.mxu0 %v1775_v4 }
 0x104   :  { %1598 = vmatmul.mubr.msk.bf16.vlgmr.msra.gmra.mrb[16].mxu0 %vm1242_vm10, %v1777_v19 }
 0x105   :  { %1622 = vmatpush3.bf16.msra.mxu0 %v1826_v5  ;;  %1637 = vmatprep.mubr.msk.bf16.mxu0 %vm1776_vm0, %v1775_v4 }
 0x106   :  { %1623 = vmatprep.subr.bf16.mxu0 %v1775_v4 }
 0x109   :  { %1624 = vmatpush3.bf16.msra.mxu0 %v1840_v7  ;;  %v1742_v7 = vld [vmem:[%s2242_s2 + $0xd0] sm:$0xff]  }
 0x10a   :  { %1625 = vmatprep.subr.bf16.mxu0 %v1775_v4 }
 0x10d   :  { %1626 = vmatpush3.bf16.msra.mxu0 %v1853_v10  ;;  %v1745_v10 = vld [vmem:[%s2242_s2 + $0xe8] sm:$0xff]  }
 0x10e   :  { %1627 = vmatprep.subr.bf16.mxu0 %v1775_v4 }
 0x111   :  { %1628 = vmatpush3.bf16.msra.mxu0 %v1860_v11  ;;  %v1746_v11 = vld [vmem:[%s2242_s2 + $0xf0] sm:$0xff]  }
 0x112   :  { %1629 = vmatprep.subr.bf16.mxu0 %v1775_v4 }
 0x115   :  { %1630 = vmatpush3.bf16.msra.mxu0 %v1867_v12  ;;  %v1747_v12 = vld [vmem:[%s2242_s2 + $0xf8] sm:$0xff]  }
 0x116   :  { %1631 = vmatprep.subr.bf16.mxu0 %v1775_v4 }
 0x119   :  { %1632 = vmatpush3.bf16.msra.mxu0 %v1874_v13 }
 0x11a   :  { %1633 = vmatprep.subr.bf16.mxu0 %v1775_v4 }
 0x11d   :  { %1634 = vmatpush3.bf16.msra.mxu0 %v1881_v14  ;;  %v1748_v14 = vld [vmem:[%s2242_s2 + $0x100] sm:$0xff]  }
 0x11e   :  { %1635 = vmatprep.subr.bf16.mxu0 %v1775_v4 }
 0x121   :  { %1636 = vmatpush3.bf16.msra.mxu0 %v1888_v15 }
 0x122   :  { %1661 = vmatprep.subr.bf16.mxu0 %v1775_v4 }
 0x124   :  { %1638 = vmatmul.mubr.msk.bf16.vlgmr.msra.gmra.mrb[20].mxu0 %vm1270_vm12, %v1777_v19  ;;  %v1749_v19 = vld [vmem:[%s2242_s2 + $0x108] sm:$0xff]  }
 0x125   :  { %1677 = vmatprep.mubr.msk.bf16.mxu0 %vm1776_vm0, %v1775_v4  ;;  %1662 = vmatpush3.bf16.msra.mxu0 %v1764_v53 }
 0x126   :  { %1663 = vmatprep.subr.bf16.mxu0 %v1775_v4 }
 0x129   :  { %1664 = vmatpush3.bf16.msra.mxu0 %v1765_v54 }
 0x12a   :  { %1665 = vmatprep.subr.bf16.mxu0 %v1775_v4 }
 0x12d   :  { %1666 = vmatpush3.bf16.msra.mxu0 %v1766_v56 }
 0x12e   :  { %1667 = vmatprep.subr.bf16.mxu0 %v1775_v4 }
 0x131   :  { %1668 = vmatpush3.bf16.msra.mxu0 %v1767_v58 }
 0x132   :  { %1669 = vmatprep.subr.bf16.mxu0 %v1775_v4 }
 0x157   :  { %v133_v33 = vpop.f32.mrb[0].mxu0 }
 0x158   :  { %v139_v35 = vpack.c.bf16 %v133_v33, %v133_v33  ;;  %v1439_v36 = vpop.f32.mrb[1].mxu0  ;;  %v1758_v33 = vld [vmem:[%s2242_s2 + $0x150] sm:$0xff]  }
 0x159   :  { %v136_v37 = vpop.f32.mrb[2].mxu0  ;;  %v1761_v36 = vld [vmem:[%s2242_s2 + $0x168] sm:$0xff]  }
 0x15a   :  { %v1440_v38 = vpop.f32.mrb[3].mxu0  ;;  %1458 = vmatmul.mubr.bf16.vlgmr.msra.gmra.mrb[0].mxu1 %v139_v35  ;;  %v1760_v35 = vld [vmem:[%s2242_s2 + $0x160] sm:$0xff]   ;;  %v1762_v37 = vld [vmem:[%s2242_s2 + $0x170] sm:$0xff]  }
 0x15b   :  { %1482 = vmatpush3.bf16.msra.mxu1 %v1724_v34  ;;  %1497 = vmatprep.mubr.msk.bf16.mxu1 %vm1776_vm0, %v1775_v4  ;;  %v1759_v34 = vld [vmem:[%s2242_s2 + $0x158] sm:$0xff]  }
 0x15c   :  { %1483 = vmatprep.subr.bf16.mxu1 %v1775_v4  ;;  %v1763_v38 = vld [vmem:[%s2242_s2 + $0x178] sm:$0xff]  }
 0x15f   :  { %1484 = vmatpush3.bf16.msra.mxu1 %v1725_v39 }
 0x160   :  { %1485 = vmatprep.subr.bf16.mxu1 %v1775_v4 }
 0x163   :  { %1486 = vmatpush3.bf16.msra.mxu1 %v1726_v40 }
 0x164   :  { %1487 = vmatprep.subr.bf16.mxu1 %v1775_v4 }
 0x167   :  { %1488 = vmatpush3.bf16.msra.mxu1 %v1727_v41 }
 0x168   :  { %1489 = vmatprep.subr.bf16.mxu1 %v1775_v4 }
 0x16b   :  { %1490 = vmatpush3.bf16.msra.mxu1 %v1728_v42 }
 0x16c   :  { %1491 = vmatprep.subr.bf16.mxu1 %v1775_v4 }
 0x16f   :  { %1492 = vmatpush3.bf16.msra.mxu1 %v1729_v43 }
 0x170   :  { %1493 = vmatprep.subr.bf16.mxu1 %v1775_v4 }
 0x173   :  { %1494 = vmatpush3.bf16.msra.mxu1 %v1730_v44  ;;  %v1768_v44 = vld [vmem:[%s2243_s4 + $0x20] sm:$0xff]  }
 0x174   :  { %1495 = vmatprep.subr.bf16.mxu1 %v1775_v4  ;;  %1670 = vmatpush3.bf16.msra.mxu0 %v1768_v44 }
 0x175   :  { %1671 = vmatprep.subr.bf16.mxu0 %v1775_v4 }
 0x177   :  { %v288_v46 = vpop.f32.mrb[4].mxu0  ;;  %1496 = vmatpush3.bf16.msra.mxu1 %v1731_v45  ;;  %v1769_v45 = vld [vmem:[%s2243_s4 + $0x28] sm:$0xff]  }
 0x178   :  { %v294_v48 = vpack.c.bf16 %v288_v46, %v288_v46  ;;  %v1479_v49 = vpop.f32.mrb[5].mxu0  ;;  %1521 = vmatprep.subr.bf16.mxu1 %v1775_v4  ;;  %1672 = vmatpush3.bf16.msra.mxu0 %v1769_v45  ;;  %v1770_v46 = vld [vmem:[%s2243_s4 + $0x30] sm:$0xff]  }
 0x179   :  { %v291_v50 = vpop.f32.mrb[6].mxu0  ;;  %1673 = vmatprep.subr.bf16.mxu0 %v1775_v4 }
 0x17a   :  { %v1480_v51 = vpop.f32.mrb[7].mxu0  ;;  %1498 = vmatmul.mubr.bf16.vlgmr.msra.gmra.mrb[0].mxu1 %v294_v48  ;;  %v42_v48 = vld [vmem:[%s2244_s3] sm:$0xff] }
 0x17b   :  { %1522 = vmatpush3.bf16.msra.mxu1 %v1732_v47  ;;  %1537 = vmatprep.mubr.msk.bf16.mxu1 %vm1776_vm0, %v1775_v4  ;;  %v1771_v47 = vld [vmem:[%s2243_s4 + $0x38] sm:$0xff]  }
 0x17c   :  { %1523 = vmatprep.subr.bf16.mxu1 %v1775_v4  ;;  %1674 = vmatpush3.bf16.msra.mxu0 %v1770_v46 }
 0x17d   :  { %1675 = vmatprep.subr.bf16.mxu0 %v1775_v4 }
 0x17f   :  { %1524 = vmatpush3.bf16.msra.mxu1 %v1733_v52 }
 0x180   :  { %1525 = vmatprep.subr.bf16.mxu1 %v1775_v4  ;;  %1676 = vmatpush3.bf16.msra.mxu0 %v1771_v47 }
 0x183   :  { %1526 = vmatpush3.bf16.msra.mxu1 %v1734_v55 }
 0x184   :  { %1527 = vmatprep.subr.bf16.mxu1 %v1775_v4 }
 0x187   :  { %1528 = vmatpush3.bf16.msra.mxu1 %v1735_v57 }
 0x188   :  { %1529 = vmatprep.subr.bf16.mxu1 %v1775_v4 }
 0x18b   :  { %1530 = vmatpush3.bf16.msra.mxu1 %v1736_v59 }
 0x18c   :  { %1531 = vmatprep.subr.bf16.mxu1 %v1775_v4 }
 0x18f   :  { %1532 = vmatpush3.bf16.msra.mxu1 %v1737_v60 }
 0x190   :  { %1533 = vmatprep.subr.bf16.mxu1 %v1775_v4 }
 0x193   :  { %1534 = vmatpush3.bf16.msra.mxu1 %v1738_v61 }
 0x194   :  { %1535 = vmatprep.subr.bf16.mxu1 %v1775_v4 }
 0x197   :  { %v444_v63 = vpop.f32.mrb[8].mxu0  ;;  %1536 = vmatpush3.bf16.msra.mxu1 %v1739_v62 }
 0x198   :  { %v450_v1 = vpack.c.bf16 %v444_v63, %v444_v63  ;;  %v1519_v2 = vpop.f32.mrb[9].mxu0  ;;  %1561 = vmatprep.subr.bf16.mxu1 %v1775_v4 }
 0x199   :  { %v447_v3 = vpop.f32.mrb[10].mxu0 }
 0x19a   :  { %v1520_v5 = vpop.f32.mrb[11].mxu0  ;;  %1538 = vmatmul.mubr.bf16.vlgmr.msra.gmra.mrb[0].mxu1 %v450_v1 }
 0x19b   :  { %1562 = vmatpush3.bf16.msra.mxu1 %v1740_v0  ;;  %1577 = vmatprep.mubr.msk.bf16.mxu1 %vm1776_vm0, %v1775_v4 }
 0x19c   :  { %1563 = vmatprep.subr.bf16.mxu1 %v1775_v4 }
 0x19f   :  { %1564 = vmatpush3.bf16.msra.mxu1 %v1741_v6 }
 0x1a0   :  { %1565 = vmatprep.subr.bf16.mxu1 %v1775_v4 }
 0x1a3   :  { %1566 = vmatpush3.bf16.msra.mxu1 %v1742_v7 }
 0x1a4   :  { %1567 = vmatprep.subr.bf16.mxu1 %v1775_v4 }
 0x1a7   :  { %1568 = vmatpush3.bf16.msra.mxu1 %v1743_v8 }
 0x1a8   :  { %1569 = vmatprep.subr.bf16.mxu1 %v1775_v4 }
 0x1ab   :  { %1570 = vmatpush3.bf16.msra.mxu1 %v1744_v9 }
 0x1ac   :  { %1571 = vmatprep.subr.bf16.mxu1 %v1775_v4 }
 0x1af   :  { %1572 = vmatpush3.bf16.msra.mxu1 %v1745_v10 }
 0x1b0   :  { %1573 = vmatprep.subr.bf16.mxu1 %v1775_v4 }
 0x1b3   :  { %1574 = vmatpush3.bf16.msra.mxu1 %v1746_v11 }
 0x1b4   :  { %1575 = vmatprep.subr.bf16.mxu1 %v1775_v4 }
 0x1b7   :  { %v600_v13 = vpop.f32.mrb[12].mxu0  ;;  %1576 = vmatpush3.bf16.msra.mxu1 %v1747_v12 }
 0x1b8   :  { %v606_v15 = vpack.c.bf16 %v600_v13, %v600_v13  ;;  %v1559_v16 = vpop.f32.mrb[13].mxu0  ;;  %1601 = vmatprep.subr.bf16.mxu1 %v1775_v4 }
 0x1b9   :  { %v603_v17 = vpop.f32.mrb[14].mxu0 }
 0x1ba   :  { %v1560_v18 = vpop.f32.mrb[15].mxu0  ;;  %1578 = vmatmul.mubr.bf16.vlgmr.msra.gmra.mrb[0].mxu1 %v606_v15 }
 0x1bb   :  { %1602 = vmatpush3.bf16.msra.mxu1 %v1748_v14  ;;  %1617 = vmatprep.mubr.msk.bf16.mxu1 %vm1776_vm0, %v1775_v4 }
 0x1bc   :  { %1603 = vmatprep.subr.bf16.mxu1 %v1775_v4 }
 0x1bf   :  { %1604 = vmatpush3.bf16.msra.mxu1 %v1749_v19 }
 0x1c0   :  { %1605 = vmatprep.subr.bf16.mxu1 %v1775_v4 }
 0x1c3   :  { %1606 = vmatpush3.bf16.msra.mxu1 %v1750_v20 }
 0x1c4   :  { %1607 = vmatprep.subr.bf16.mxu1 %v1775_v4 }
 0x1c7   :  { %1608 = vmatpush3.bf16.msra.mxu1 %v1751_v21 }
 0x1c8   :  { %1609 = vmatprep.subr.bf16.mxu1 %v1775_v4 }
 0x1cb   :  { %1610 = vmatpush3.bf16.msra.mxu1 %v1752_v22 }
 0x1cc   :  { %1611 = vmatprep.subr.bf16.mxu1 %v1775_v4 }
 0x1cf   :  { %1612 = vmatpush3.bf16.msra.mxu1 %v1753_v23 }
 0x1d0   :  { %1613 = vmatprep.subr.bf16.mxu1 %v1775_v4 }
 0x1d3   :  { %1614 = vmatpush3.bf16.msra.mxu1 %v1754_v24 }
 0x1d4   :  { %1615 = vmatprep.subr.bf16.mxu1 %v1775_v4 }
 0x1d7   :  { %v756_v26 = vpop.f32.mrb[16].mxu0  ;;  %1616 = vmatpush3.bf16.msra.mxu1 %v1755_v25 }
 0x1d8   :  { %v762_v28 = vpack.c.bf16 %v756_v26, %v756_v26  ;;  %v1599_v29 = vpop.f32.mrb[17].mxu0  ;;  %1641 = vmatprep.subr.bf16.mxu1 %v1775_v4 }
 0x1d9   :  { %v759_v30 = vpop.f32.mrb[18].mxu0 }
 0x1da   :  { %v1600_v31 = vpop.f32.mrb[19].mxu0  ;;  %1618 = vmatmul.mubr.bf16.vlgmr.msra.gmra.mrb[0].mxu1 %v762_v28 }
 0x1db   :  { %1642 = vmatpush3.bf16.msra.mxu1 %v1756_v27  ;;  %1657 = vmatprep.mubr.msk.bf16.mxu1 %vm1776_vm0, %v1775_v4 }
 0x1dc   :  { %1643 = vmatprep.subr.bf16.mxu1 %v1775_v4 }
 0x1df   :  { %1644 = vmatpush3.bf16.msra.mxu1 %v1757_v32 }
 0x1e0   :  { %1645 = vmatprep.subr.bf16.mxu1 %v1775_v4 }
 0x1e3   :  { %1646 = vmatpush3.bf16.msra.mxu1 %v1758_v33 }
 0x1e4   :  { %1647 = vmatprep.subr.bf16.mxu1 %v1775_v4 }
 0x1e7   :  { %1648 = vmatpush3.bf16.msra.mxu1 %v1759_v34 }
 0x1e8   :  { %1649 = vmatprep.subr.bf16.mxu1 %v1775_v4 }
 0x1eb   :  { %1650 = vmatpush3.bf16.msra.mxu1 %v1760_v35 }
 0x1ec   :  { %1651 = vmatprep.subr.bf16.mxu1 %v1775_v4 }
 0x1ef   :  { %1652 = vmatpush3.bf16.msra.mxu1 %v1761_v36 }
 0x1f0   :  { %1653 = vmatprep.subr.bf16.mxu1 %v1775_v4 }
 0x1f3   :  { %1654 = vmatpush3.bf16.msra.mxu1 %v1762_v37 }
 0x1f4   :  { %1655 = vmatprep.subr.bf16.mxu1 %v1775_v4  ;;  %v1043_v4 = vld [vmem:[%s2245_s5] sm:$0xff] }
 0x1f7   :  { %v912_v39 = vpop.f32.mrb[20].mxu0  ;;  %1656 = vmatpush3.bf16.msra.mxu1 %v1763_v38 }
 0x1f8   :  { %v918_v40 = vpack.c.bf16 %v912_v39, %v912_v39  ;;  %v1639_v41 = vpop.f32.mrb[21].mxu0 }
 0x1f9   :  { %v915_v42 = vpop.f32.mrb[22].mxu0 }
 0x1fa   :  { %v1640_v43 = vpop.f32.mrb[23].mxu0  ;;  %1658 = vmatmul.mubr.bf16.vlgmr.msra.gmra.mrb[0].mxu1 %v918_v40 }
 0x2cd   :  { %v1018_v49 = vpop.f32.mrb[0].mxu1 }
 0x2ce   :  { %v1681_v50 = vadd.f32 %v1018_v49, %v42_v48  ;;  %v1659_v51 = vpop.f32.mrb[1].mxu1 }
 0x2cf   :  { %v1021_v52 = vpop.f32.mrb[2].mxu1 }
 0x2d0   :  { %1772 = vtanh.f32 %v1681_v50  ;;  %v1660_v53 = vpop.f32.mrb[3].mxu1 }
 0x2da   :  { %v1773_v54 = vpop.eup %1772 }
 0x2db   :  { %v1026_v55 = vpack.c.bf16 %v1773_v54, %v1773_v54 }
 0x2dd   :  { %1678 = vmatmul.mubr.bf16.vlgmr.msra.gmra.mrb[24].mxu0 %v1026_v55 }
 0x3b0   :  { %v1126_v56 = vpop.f32.mrb[24].mxu0 }
 0x3b1   :  { %v1127_v57 = vadd.f32 %v1126_v56, %v1043_v4  ;;  %v1679_v58 = vpop.f32.mrb[25].mxu0 }
 0x3b2   :  { %v1129_v59 = vpop.f32.mrb[26].mxu0 }
 0x3b3   :  { %1132 = vst [vmem:[%s2246_s6] sm:$0xff] %v1127_v57  ;;  %v1680_v60 = vpop.f32.mrb[27].mxu0 }

</bundles_post_ra>
